<compile_context>
chip_gen: v6e
topology: v6e:2x2x1
jax: 0.10.0
libtpu: 0.0.40
codegen_flags: <defaults>
</compile_context>

<pallas_src>
import jax
import jax.numpy as jnp
from jax import lax
from jax.experimental import pallas as pl
from jax.experimental.pallas import tpu as pltpu

_LN10 = 2.302585092994046


def _add_noise_kernel(idx_ref, audio_ref, bank_ref, snr_ref, out_ref,
                      noise_ref):
    # idx_ref:   (B,)           i32 SMEM  (scalar-prefetched bank row per clip)
    # audio_ref: (C, T)         f32 VMEM  — a group of C clips
    # bank_ref:  (bank_size, T) f32 VMEM  — whole noise bank, VMEM-resident
    # snr_ref:   (C, 1)         f32 VMEM  — target SNR per clip
    # out_ref:   (C, T)         f32 VMEM
    # noise_ref: (C, T)         f32 VMEM scratch — gathered bank rows
    g = pl.program_id(0)
    C = audio_ref.shape[0]

    def copy_row(c):
        row = idx_ref[g * C + c]
        noise_ref[pl.ds(c, 1), :] = bank_ref[pl.ds(row, 1), :]

    if C <= 16:
        # Small group: static unroll (indices become constants).
        for c in range(C):
            copy_row(c)
    else:
        def body(c, carry):
            copy_row(c)
            return carry
        lax.fori_loop(0, C, body, 0)

    audio = audio_ref[...]          # (C, T)
    noise = noise_ref[...]          # (C, T)

    # Per-clip energies (lane-axis reduction).  Like torchaudio there is no
    # epsilon clamp: an all-zero clip or bank row yields -inf/NaN (documented
    # precondition; the synthetic bank is never silent).
    e_sig = jnp.sum(audio * audio, axis=-1, keepdims=True)      # (C, 1)
    e_noise = jnp.sum(noise * noise, axis=-1, keepdims=True)    # (C, 1)

    # original_snr_db = 10 * (log10(e_sig) - log10(e_noise))
    original_snr_db = (10.0 / _LN10) * (jnp.log(e_sig) - jnp.log(e_noise))
    # scale = 10 ** ((original_snr_db - snr_db) / 20)   (log/exp hit the EUP)
    scale = jnp.exp((original_snr_db - snr_ref[...]) * (_LN10 / 20.0))  # (C,1)

    out_ref[...] = audio + scale * noise


def _choose_clip_group(B, T, target_bytes=2 << 20):
    """Largest C that divides B, keeps the (C, T) f32 block <= target_bytes,
    and satisfies the sublane rule (C % 8 == 0 or C == B)."""
    cap = max(1, target_bytes // (T * 4))
    for C in range(min(B, cap), 0, -1):
        if B % C == 0 and (C % 8 == 0 or C == B):
            return C
    # Fallback: whole batch as one (full-dim) block — always a legal block.
    return B


def add_noise_pallas(audio, noise_bank, idx, snr_db, clip_group=None):
    """Batched torchaudio-style add_noise.

    audio:      (B, T) float32
    noise_bank: (bank_size, T) float32
    idx:        (B,) int32   -- bank row per clip
    snr_db:     (B,) float32 -- target SNR per clip
    returns     (B, T) float32
    """
    B, T = audio.shape
    bank_size, Tn = noise_bank.shape
    assert T == Tn, "audio and noise segments must have the same length"
    assert T % 128 == 0, "segment_size must be a multiple of 128"
    # TODO(synk): pad-to-128 path for arbitrary T (zero-pad is energy-neutral).
    # TODO(synk): for very long T, split T across an "arbitrary" grid axis with
    # an energy accumulator instead of growing the single block (VMEM budget).

    C = clip_group if clip_group is not None else _choose_clip_group(B, T)
    assert B % C == 0, "clip_group must divide the batch size"
    assert C % 8 == 0 or C == B, "clip_group must be a multiple of 8 or == B"
    grid = (B // C,)

    audio = audio.astype(jnp.float32)
    bank = noise_bank.astype(jnp.float32)
    idx = idx.astype(jnp.int32)
    snr2d = snr_db.astype(jnp.float32).reshape(B, 1)

    grid_spec = pltpu.PrefetchScalarGridSpec(
        num_scalar_prefetch=1,            # idx -> SMEM
        grid=grid,
        in_specs=[
            # group of C audio clips
            pl.BlockSpec((C, T), lambda g, idx_ref: (g, 0)),
            # whole noise bank, constant block index -> fetched once, resident
            pl.BlockSpec((bank_size, T), lambda g, idx_ref: (0, 0)),
            # per-clip SNR (C, 1)
            pl.BlockSpec((C, 1), lambda g, idx_ref: (g, 0)),
        ],
        out_specs=pl.BlockSpec((C, T), lambda g, idx_ref: (g, 0)),
        scratch_shapes=[pltpu.VMEM((C, T), jnp.float32)],
    )

    # VMEM budget (double-buffered audio/out, resident bank, gather scratch).
    block_bytes = C * T * 4
    bank_bytes = bank_size * T * 4
    vmem_est = 2 * 2 * block_bytes + 2 * bank_bytes + block_bytes + (1 << 16)
    vmem_limit = int(min(64 << 20, max(32 << 20, vmem_est * 5 // 4)))

    out = pl.pallas_call(
        _add_noise_kernel,
        out_shape=jax.ShapeDtypeStruct((B, T), jnp.float32),
        grid_spec=grid_spec,
        compiler_params=pltpu.CompilerParams(
            dimension_semantics=("parallel",),
            vmem_limit_bytes=vmem_limit),
    )(idx, audio, bank, snr2d)

    return out


class RandomBackgroundNoise:
    """JAX/Pallas port of the PyTorch RandomBackgroundNoise module.

    The noise bank is built deterministically in-script (no wav files); each
    bank row plays the role of cut_random_segment_repeat(audio, segment_size).
    The whole forward (random idx/SNR draw + add_noise kernel) stays on-device
    under jax.jit.
    """

    def __init__(self, sample_rate=8000, segment_size=2048, bank_size=8,
                 snr_dbs_range=(10, 30), seed=0):
        self.min_snr, self.max_snr = snr_dbs_range
        bank_key = jax.random.PRNGKey(seed)
        # Deterministic synthetic noise bank: (bank_size, segment_size)
        self.bank = 0.1 * jax.random.normal(
            bank_key, (bank_size, segment_size), dtype=jnp.float32)
        # TODO(synk): the `Noise()` noiser wrapper is undefined in the source
        # module; treated as identity on the selected bank row.
        self._forward = jax.jit(self._forward_impl)

    def _forward_impl(self, audio, rng_key):
        # audio: (B, T) -> (B, T); random draws stay on device (traceable).
        B = audio.shape[0]
        k_idx, k_snr = jax.random.split(rng_key)
        idx = jax.random.randint(k_idx, (B,), 0, self.bank.shape[0],
                                 dtype=jnp.int32)
        snr_db = jax.random.randint(
            k_snr, (B,), self.min_snr, self.max_snr + 1).astype(jnp.float32)
        return add_noise_pallas(audio, self.bank, idx, snr_db)

    def __call__(self, audio, rng_key):
        # Accepts a single clip (T,) or a batch (B, T).
        squeeze = audio.ndim == 1
        if squeeze:
            audio = audio[None, :]
        out = self._forward(audio, rng_key)
        return out[0] if squeeze else out


def _reference_add_noise(audio, noise, snr_db):
    # Plain-JAX replica of torchaudio.functional.add_noise.
    e_sig = jnp.sum(audio * audio, axis=-1, keepdims=True)
    e_noise = jnp.sum(noise * noise, axis=-1, keepdims=True)
    original_snr_db = 10.0 * (jnp.log10(e_sig) - jnp.log10(e_noise))
    scale = 10.0 ** ((original_snr_db - snr_db) / 20.0)
    return audio + scale * noise


if __name__ == "__main__":
    B, T = 16, 2048          # small batch of short segments
    BANK_SIZE = 8

    key = jax.random.PRNGKey(0)
    k_audio, k_call = jax.random.split(key)
    audio = jax.random.normal(k_audio, (B, T), dtype=jnp.float32)

    aug = RandomBackgroundNoise(segment_size=T, bank_size=BANK_SIZE, seed=0)
    noisy = jax.block_until_ready(aug(audio, k_call))

    # Cross-check against a plain-JAX reference replaying the same random draws.
    k_idx, k_snr = jax.random.split(k_call)
    idx = jax.random.randint(k_idx, (B,), 0, BANK_SIZE, dtype=jnp.int32)
    snr_db = jax.random.randint(
        k_snr, (B,), aug.min_snr, aug.max_snr + 1).astype(jnp.float32)
    noise = aug.bank[idx]                                  # (B, T)
    ref = _reference_add_noise(audio, noise, snr_db[:, None])

    assert noisy.shape == audio.shape
    assert jnp.allclose(noisy, ref, rtol=1e-5, atol=1e-5)

    # Also exercise a multi-step grid (clip groups of 8 -> grid=(2,), bank
    # resident across steps, fori_loop/static-unroll gather paths).
    out2 = jax.block_until_ready(
        add_noise_pallas(audio, aug.bank, idx, snr_db, clip_group=8))
    assert jnp.allclose(out2, ref, rtol=1e-5, atol=1e-5)

    # Also exercise the single-clip path (original module's signature).
    single = jax.block_until_ready(aug(audio[0], k_call))
    assert single.shape == (T,)

    print("KERNEL_OK")
</pallas_src>

<mosaic_0001>
module attributes {stable_mosaic.version = 11 : i64} {
  func.func @_add_noise_kernel(%arg0: i32, %arg1: memref<16xi32, #tpu.memory_space<smem>>, %arg2: memref<16x2048xf32, #tpu.memory_space<vmem>>, %arg3: memref<8x2048xf32, #tpu.memory_space<vmem>>, %arg4: memref<16x1xf32, #tpu.memory_space<vmem>>, %arg5: memref<16x2048xf32, #tpu.memory_space<vmem>>, %arg6: memref<16x2048xf32, #tpu.memory_space<vmem>>) attributes {dimension_semantics = [#tpu.dimension_semantics<parallel>], iteration_bounds = array<i64: 1>, scalar_prefetch = 1 : i64, scratch_operands = 1 : i64, tpu.core_type = #tpu.core_type<tc>, window_params = [{transform_indices = @transform_0, window_bounds = array<i64: 16, 2048>}, {pipeline_mode = #tpu.pipeline_mode<synchronous>, transform_indices = @transform_1, window_bounds = array<i64: 8, 2048>}, {transform_indices = @transform_2, window_bounds = array<i64: 16, 1>}, {transform_indices = @transform_3, window_bounds = array<i64: 16, 2048>}]} {
    %c16_i32 = arith.constant 16 : i32
    %0 = arith.muli %arg0, %c16_i32 : i32
    %c0_i32 = arith.constant 0 : i32
    %1 = arith.addi %0, %c0_i32 : i32
    %2 = arith.index_cast %1 : i32 to index
    %3 = memref.load %arg1[%2] : memref<16xi32, #tpu.memory_space<smem>>
    %4 = arith.index_cast %3 : i32 to index
    %c0 = arith.constant 0 : index
    %5 = vector.load %arg3[%4, %c0] : memref<8x2048xf32, #tpu.memory_space<vmem>>, vector<1x2048xf32>
    %c0_0 = arith.constant 0 : index
    %c0_1 = arith.constant 0 : index
    %6 = vector.load %arg6[%c0_0, %c0_1] : memref<16x2048xf32, #tpu.memory_space<vmem>>, vector<1x2048xf32>
    tpu.vector_store %arg6[%c0_0, %c0_1], %5 {strides = array<i32>} : memref<16x2048xf32, #tpu.memory_space<vmem>>, vector<1x2048xf32>,
    %c16_i32_2 = arith.constant 16 : i32
    %7 = arith.muli %arg0, %c16_i32_2 : i32
    %c1_i32 = arith.constant 1 : i32
    %8 = arith.addi %7, %c1_i32 : i32
    %9 = arith.index_cast %8 : i32 to index
    %10 = memref.load %arg1[%9] : memref<16xi32, #tpu.memory_space<smem>>
    %11 = arith.index_cast %10 : i32 to index
    %c0_3 = arith.constant 0 : index
    %12 = vector.load %arg3[%11, %c0_3] : memref<8x2048xf32, #tpu.memory_space<vmem>>, vector<1x2048xf32>
    %c1 = arith.constant 1 : index
    %c0_4 = arith.constant 0 : index
    %13 = vector.load %arg6[%c1, %c0_4] : memref<16x2048xf32, #tpu.memory_space<vmem>>, vector<1x2048xf32>
    tpu.vector_store %arg6[%c1, %c0_4], %12 {strides = array<i32>} : memref<16x2048xf32, #tpu.memory_space<vmem>>, vector<1x2048xf32>,
    %c16_i32_5 = arith.constant 16 : i32
    %14 = arith.muli %arg0, %c16_i32_5 : i32
    %c2_i32 = arith.constant 2 : i32
    %15 = arith.addi %14, %c2_i32 : i32
    %16 = arith.index_cast %15 : i32 to index
    %17 = memref.load %arg1[%16] : memref<16xi32, #tpu.memory_space<smem>>
    %18 = arith.index_cast %17 : i32 to index
    %c0_6 = arith.constant 0 : index
    %19 = vector.load %arg3[%18, %c0_6] : memref<8x2048xf32, #tpu.memory_space<vmem>>, vector<1x2048xf32>
    %c2 = arith.constant 2 : index
    %c0_7 = arith.constant 0 : index
    %20 = vector.load %arg6[%c2, %c0_7] : memref<16x2048xf32, #tpu.memory_space<vmem>>, vector<1x2048xf32>
    tpu.vector_store %arg6[%c2, %c0_7], %19 {strides = array<i32>} : memref<16x2048xf32, #tpu.memory_space<vmem>>, vector<1x2048xf32>,
    %c16_i32_8 = arith.constant 16 : i32
    %21 = arith.muli %arg0, %c16_i32_8 : i32
    %c3_i32 = arith.constant 3 : i32
    %22 = arith.addi %21, %c3_i32 : i32
    %23 = arith.index_cast %22 : i32 to index
    %24 = memref.load %arg1[%23] : memref<16xi32, #tpu.memory_space<smem>>
    %25 = arith.index_cast %24 : i32 to index
    %c0_9 = arith.constant 0 : index
    %26 = vector.load %arg3[%25, %c0_9] : memref<8x2048xf32, #tpu.memory_space<vmem>>, vector<1x2048xf32>
    %c3 = arith.constant 3 : index
    %c0_10 = arith.constant 0 : index
    %27 = vector.load %arg6[%c3, %c0_10] : memref<16x2048xf32, #tpu.memory_space<vmem>>, vector<1x2048xf32>
    tpu.vector_store %arg6[%c3, %c0_10], %26 {strides = array<i32>} : memref<16x2048xf32, #tpu.memory_space<vmem>>, vector<1x2048xf32>,
    %c16_i32_11 = arith.constant 16 : i32
    %28 = arith.muli %arg0, %c16_i32_11 : i32
    %c4_i32 = arith.constant 4 : i32
    %29 = arith.addi %28, %c4_i32 : i32
    %30 = arith.index_cast %29 : i32 to index
    %31 = memref.load %arg1[%30] : memref<16xi32, #tpu.memory_space<smem>>
    %32 = arith.index_cast %31 : i32 to index
    %c0_12 = arith.constant 0 : index
    %33 = vector.load %arg3[%32, %c0_12] : memref<8x2048xf32, #tpu.memory_space<vmem>>, vector<1x2048xf32>
    %c4 = arith.constant 4 : index
    %c0_13 = arith.constant 0 : index
    %34 = vector.load %arg6[%c4, %c0_13] : memref<16x2048xf32, #tpu.memory_space<vmem>>, vector<1x2048xf32>
    tpu.vector_store %arg6[%c4, %c0_13], %33 {strides = array<i32>} : memref<16x2048xf32, #tpu.memory_space<vmem>>, vector<1x2048xf32>,
    %c16_i32_14 = arith.constant 16 : i32
    %35 = arith.muli %arg0, %c16_i32_14 : i32
    %c5_i32 = arith.constant 5 : i32
    %36 = arith.addi %35, %c5_i32 : i32
    %37 = arith.index_cast %36 : i32 to index
    %38 = memref.load %arg1[%37] : memref<16xi32, #tpu.memory_space<smem>>
    %39 = arith.index_cast %38 : i32 to index
    %c0_15 = arith.constant 0 : index
    %40 = vector.load %arg3[%39, %c0_15] : memref<8x2048xf32, #tpu.memory_space<vmem>>, vector<1x2048xf32>
    %c5 = arith.constant 5 : index
    %c0_16 = arith.constant 0 : index
    %41 = vector.load %arg6[%c5, %c0_16] : memref<16x2048xf32, #tpu.memory_space<vmem>>, vector<1x2048xf32>
    tpu.vector_store %arg6[%c5, %c0_16], %40 {strides = array<i32>} : memref<16x2048xf32, #tpu.memory_space<vmem>>, vector<1x2048xf32>,
    %c16_i32_17 = arith.constant 16 : i32
    %42 = arith.muli %arg0, %c16_i32_17 : i32
    %c6_i32 = arith.constant 6 : i32
    %43 = arith.addi %42, %c6_i32 : i32
    %44 = arith.index_cast %43 : i32 to index
    %45 = memref.load %arg1[%44] : memref<16xi32, #tpu.memory_space<smem>>
    %46 = arith.index_cast %45 : i32 to index
    %c0_18 = arith.constant 0 : index
    %47 = vector.load %arg3[%46, %c0_18] : memref<8x2048xf32, #tpu.memory_space<vmem>>, vector<1x2048xf32>
    %c6 = arith.constant 6 : index
    %c0_19 = arith.constant 0 : index
    %48 = vector.load %arg6[%c6, %c0_19] : memref<16x2048xf32, #tpu.memory_space<vmem>>, vector<1x2048xf32>
    tpu.vector_store %arg6[%c6, %c0_19], %47 {strides = array<i32>} : memref<16x2048xf32, #tpu.memory_space<vmem>>, vector<1x2048xf32>,
    %c16_i32_20 = arith.constant 16 : i32
    %49 = arith.muli %arg0, %c16_i32_20 : i32
    %c7_i32 = arith.constant 7 : i32
    %50 = arith.addi %49, %c7_i32 : i32
    %51 = arith.index_cast %50 : i32 to index
    %52 = memref.load %arg1[%51] : memref<16xi32, #tpu.memory_space<smem>>
    %53 = arith.index_cast %52 : i32 to index
    %c0_21 = arith.constant 0 : index
    %54 = vector.load %arg3[%53, %c0_21] : memref<8x2048xf32, #tpu.memory_space<vmem>>, vector<1x2048xf32>
    %c7 = arith.constant 7 : index
    %c0_22 = arith.constant 0 : index
    %55 = vector.load %arg6[%c7, %c0_22] : memref<16x2048xf32, #tpu.memory_space<vmem>>, vector<1x2048xf32>
    tpu.vector_store %arg6[%c7, %c0_22], %54 {strides = array<i32>} : memref<16x2048xf32, #tpu.memory_space<vmem>>, vector<1x2048xf32>,
    %c16_i32_23 = arith.constant 16 : i32
    %56 = arith.muli %arg0, %c16_i32_23 : i32
    %c8_i32 = arith.constant 8 : i32
    %57 = arith.addi %56, %c8_i32 : i32
    %58 = arith.index_cast %57 : i32 to index
    %59 = memref.load %arg1[%58] : memref<16xi32, #tpu.memory_space<smem>>
    %60 = arith.index_cast %59 : i32 to index
    %c0_24 = arith.constant 0 : index
    %61 = vector.load %arg3[%60, %c0_24] : memref<8x2048xf32, #tpu.memory_space<vmem>>, vector<1x2048xf32>
    %c8 = arith.constant 8 : index
    %c0_25 = arith.constant 0 : index
    %62 = vector.load %arg6[%c8, %c0_25] : memref<16x2048xf32, #tpu.memory_space<vmem>>, vector<1x2048xf32>
    tpu.vector_store %arg6[%c8, %c0_25], %61 {strides = array<i32>} : memref<16x2048xf32, #tpu.memory_space<vmem>>, vector<1x2048xf32>,
    %c16_i32_26 = arith.constant 16 : i32
    %63 = arith.muli %arg0, %c16_i32_26 : i32
    %c9_i32 = arith.constant 9 : i32
    %64 = arith.addi %63, %c9_i32 : i32
    %65 = arith.index_cast %64 : i32 to index
    %66 = memref.load %arg1[%65] : memref<16xi32, #tpu.memory_space<smem>>
    %67 = arith.index_cast %66 : i32 to index
    %c0_27 = arith.constant 0 : index
    %68 = vector.load %arg3[%67, %c0_27] : memref<8x2048xf32, #tpu.memory_space<vmem>>, vector<1x2048xf32>
    %c9 = arith.constant 9 : index
    %c0_28 = arith.constant 0 : index
    %69 = vector.load %arg6[%c9, %c0_28] : memref<16x2048xf32, #tpu.memory_space<vmem>>, vector<1x2048xf32>
    tpu.vector_store %arg6[%c9, %c0_28], %68 {strides = array<i32>} : memref<16x2048xf32, #tpu.memory_space<vmem>>, vector<1x2048xf32>,
    %c16_i32_29 = arith.constant 16 : i32
    %70 = arith.muli %arg0, %c16_i32_29 : i32
    %c10_i32 = arith.constant 10 : i32
    %71 = arith.addi %70, %c10_i32 : i32
    %72 = arith.index_cast %71 : i32 to index
    %73 = memref.load %arg1[%72] : memref<16xi32, #tpu.memory_space<smem>>
    %74 = arith.index_cast %73 : i32 to index
    %c0_30 = arith.constant 0 : index
    %75 = vector.load %arg3[%74, %c0_30] : memref<8x2048xf32, #tpu.memory_space<vmem>>, vector<1x2048xf32>
    %c10 = arith.constant 10 : index
    %c0_31 = arith.constant 0 : index
    %76 = vector.load %arg6[%c10, %c0_31] : memref<16x2048xf32, #tpu.memory_space<vmem>>, vector<1x2048xf32>
    tpu.vector_store %arg6[%c10, %c0_31], %75 {strides = array<i32>} : memref<16x2048xf32, #tpu.memory_space<vmem>>, vector<1x2048xf32>,
    %c16_i32_32 = arith.constant 16 : i32
    %77 = arith.muli %arg0, %c16_i32_32 : i32
    %c11_i32 = arith.constant 11 : i32
    %78 = arith.addi %77, %c11_i32 : i32
    %79 = arith.index_cast %78 : i32 to index
    %80 = memref.load %arg1[%79] : memref<16xi32, #tpu.memory_space<smem>>
    %81 = arith.index_cast %80 : i32 to index
    %c0_33 = arith.constant 0 : index
    %82 = vector.load %arg3[%81, %c0_33] : memref<8x2048xf32, #tpu.memory_space<vmem>>, vector<1x2048xf32>
    %c11 = arith.constant 11 : index
    %c0_34 = arith.constant 0 : index
    %83 = vector.load %arg6[%c11, %c0_34] : memref<16x2048xf32, #tpu.memory_space<vmem>>, vector<1x2048xf32>
    tpu.vector_store %arg6[%c11, %c0_34], %82 {strides = array<i32>} : memref<16x2048xf32, #tpu.memory_space<vmem>>, vector<1x2048xf32>,
    %c16_i32_35 = arith.constant 16 : i32
    %84 = arith.muli %arg0, %c16_i32_35 : i32
    %c12_i32 = arith.constant 12 : i32
    %85 = arith.addi %84, %c12_i32 : i32
    %86 = arith.index_cast %85 : i32 to index
    %87 = memref.load %arg1[%86] : memref<16xi32, #tpu.memory_space<smem>>
    %88 = arith.index_cast %87 : i32 to index
    %c0_36 = arith.constant 0 : index
    %89 = vector.load %arg3[%88, %c0_36] : memref<8x2048xf32, #tpu.memory_space<vmem>>, vector<1x2048xf32>
    %c12 = arith.constant 12 : index
    %c0_37 = arith.constant 0 : index
    %90 = vector.load %arg6[%c12, %c0_37] : memref<16x2048xf32, #tpu.memory_space<vmem>>, vector<1x2048xf32>
    tpu.vector_store %arg6[%c12, %c0_37], %89 {strides = array<i32>} : memref<16x2048xf32, #tpu.memory_space<vmem>>, vector<1x2048xf32>,
    %c16_i32_38 = arith.constant 16 : i32
    %91 = arith.muli %arg0, %c16_i32_38 : i32
    %c13_i32 = arith.constant 13 : i32
    %92 = arith.addi %91, %c13_i32 : i32
    %93 = arith.index_cast %92 : i32 to index
    %94 = memref.load %arg1[%93] : memref<16xi32, #tpu.memory_space<smem>>
    %95 = arith.index_cast %94 : i32 to index
    %c0_39 = arith.constant 0 : index
    %96 = vector.load %arg3[%95, %c0_39] : memref<8x2048xf32, #tpu.memory_space<vmem>>, vector<1x2048xf32>
    %c13 = arith.constant 13 : index
    %c0_40 = arith.constant 0 : index
    %97 = vector.load %arg6[%c13, %c0_40] : memref<16x2048xf32, #tpu.memory_space<vmem>>, vector<1x2048xf32>
    tpu.vector_store %arg6[%c13, %c0_40], %96 {strides = array<i32>} : memref<16x2048xf32, #tpu.memory_space<vmem>>, vector<1x2048xf32>,
    %c16_i32_41 = arith.constant 16 : i32
    %98 = arith.muli %arg0, %c16_i32_41 : i32
    %c14_i32 = arith.constant 14 : i32
    %99 = arith.addi %98, %c14_i32 : i32
    %100 = arith.index_cast %99 : i32 to index
    %101 = memref.load %arg1[%100] : memref<16xi32, #tpu.memory_space<smem>>
    %102 = arith.index_cast %101 : i32 to index
    %c0_42 = arith.constant 0 : index
    %103 = vector.load %arg3[%102, %c0_42] : memref<8x2048xf32, #tpu.memory_space<vmem>>, vector<1x2048xf32>
    %c14 = arith.constant 14 : index
    %c0_43 = arith.constant 0 : index
    %104 = vector.load %arg6[%c14, %c0_43] : memref<16x2048xf32, #tpu.memory_space<vmem>>, vector<1x2048xf32>
    tpu.vector_store %arg6[%c14, %c0_43], %103 {strides = array<i32>} : memref<16x2048xf32, #tpu.memory_space<vmem>>, vector<1x2048xf32>,
    %c16_i32_44 = arith.constant 16 : i32
    %105 = arith.muli %arg0, %c16_i32_44 : i32
    %c15_i32 = arith.constant 15 : i32
    %106 = arith.addi %105, %c15_i32 : i32
    %107 = arith.index_cast %106 : i32 to index
    %108 = memref.load %arg1[%107] : memref<16xi32, #tpu.memory_space<smem>>
    %109 = arith.index_cast %108 : i32 to index
    %c0_45 = arith.constant 0 : index
    %110 = vector.load %arg3[%109, %c0_45] : memref<8x2048xf32, #tpu.memory_space<vmem>>, vector<1x2048xf32>
    %c15 = arith.constant 15 : index
    %c0_46 = arith.constant 0 : index
    %111 = vector.load %arg6[%c15, %c0_46] : memref<16x2048xf32, #tpu.memory_space<vmem>>, vector<1x2048xf32>
    tpu.vector_store %arg6[%c15, %c0_46], %110 {strides = array<i32>} : memref<16x2048xf32, #tpu.memory_space<vmem>>, vector<1x2048xf32>,
    %c0_47 = arith.constant 0 : index
    %c0_48 = arith.constant 0 : index
    %112 = vector.load %arg2[%c0_47, %c0_48] : memref<16x2048xf32, #tpu.memory_space<vmem>>, vector<16x2048xf32>
    %c0_49 = arith.constant 0 : index
    %c0_50 = arith.constant 0 : index
    %113 = vector.load %arg6[%c0_49, %c0_50] : memref<16x2048xf32, #tpu.memory_space<vmem>>, vector<16x2048xf32>
    %114 = arith.mulf %112, %112 : vector<16x2048xf32>
    %cst = arith.constant dense<0.000000e+00> : vector<16xf32>
    %115 = vector.multi_reduction <add>, %114, %cst [1] : vector<16x2048xf32> to vector<16xf32>
    %116 = vector.shape_cast %115 : vector<16xf32> to vector<16x1xf32>
    %117 = arith.mulf %113, %113 : vector<16x2048xf32>
    %cst_51 = arith.constant dense<0.000000e+00> : vector<16xf32>
    %118 = vector.multi_reduction <add>, %117, %cst_51 [1] : vector<16x2048xf32> to vector<16xf32>
    %119 = vector.shape_cast %118 : vector<16xf32> to vector<16x1xf32>
    %120 = math.log %116 : vector<16x1xf32>
    %121 = math.log %119 : vector<16x1xf32>
    %122 = arith.subf %120, %121 : vector<16x1xf32>
    %cst_52 = arith.constant 4.34294462 : f32
    %123 = vector.broadcast %cst_52 : f32 to vector<16x1xf32>
    %124 = arith.mulf %123, %122 : vector<16x1xf32>
    %c0_53 = arith.constant 0 : index
    %c0_54 = arith.constant 0 : index
    %125 = vector.load %arg4[%c0_53, %c0_54] : memref<16x1xf32, #tpu.memory_space<vmem>>, vector<16x1xf32>
    %126 = arith.subf %124, %125 : vector<16x1xf32>
    %cst_55 = arith.constant 0.115129255 : f32
    %127 = vector.broadcast %cst_55 : f32 to vector<16x1xf32>
    %128 = arith.mulf %126, %127 : vector<16x1xf32>
    %129 = math.exp %128 : vector<16x1xf32>
    %130 = vector.broadcast %129 : vector<16x1xf32> to vector<16x2048xf32>
    %131 = arith.mulf %130, %113 : vector<16x2048xf32>
    %132 = arith.addf %112, %131 : vector<16x2048xf32>
    %c0_56 = arith.constant 0 : index
    %c0_57 = arith.constant 0 : index
    %133 = vector.load %arg5[%c0_56, %c0_57] : memref<16x2048xf32, #tpu.memory_space<vmem>>, vector<16x2048xf32>
    tpu.vector_store %arg5[%c0_56, %c0_57], %132 {strides = array<i32>} : memref<16x2048xf32, #tpu.memory_space<vmem>>, vector<16x2048xf32>,
    return
  }
  func.func @transform_0(%arg0: i32, %arg1: memref<16xi32, #tpu.memory_space<smem>>) -> (i32, i32) {
    %c0_i32 = arith.constant 0 : i32
    %c0_i32_0 = arith.constant 0 : i32
    return %arg0, %c0_i32 : i32, i32
  }
  func.func @transform_1(%arg0: i32, %arg1: memref<16xi32, #tpu.memory_space<smem>>) -> (i32, i32) {
    %c0_i32 = arith.constant 0 : i32
    %c0_i32_0 = arith.constant 0 : i32
    %c0_i32_1 = arith.constant 0 : i32
    return %c0_i32, %c0_i32_0 : i32, i32
  }
  func.func @transform_2(%arg0: i32, %arg1: memref<16xi32, #tpu.memory_space<smem>>) -> (i32, i32) {
    %c0_i32 = arith.constant 0 : i32
    %c0_i32_0 = arith.constant 0 : i32
    return %arg0, %c0_i32 : i32, i32
  }
  func.func @transform_3(%arg0: i32, %arg1: memref<16xi32, #tpu.memory_space<smem>>) -> (i32, i32) {
    %c0_i32 = arith.constant 0 : i32
    %c0_i32_0 = arith.constant 0 : i32
    return %arg0, %c0_i32 : i32, i32
  }
}

</mosaic_0001>

<bundles_post_ra>
// kernel: _forward_impl.1
= control target key start
LH: loop header
LB: loop body
LE: loop exit
PB: predicated region body
PF: predicated region fallthrough
CT: control target
= control target key end

     0   :  { %s1613_s0 = inlined_call_operand.vmem [shape: s32[16], index: 0, kind: input, shape index: {}]   ;;  %s1614_s1 = inlined_call_operand.hbm [shape: f32[16,2048], index: 1, kind: input, shape index: {}]   ;;  %s1615_s2 = inlined_call_operand.vmem [shape: f32[8,2048], index: 2, kind: input, shape index: {}]   ;;  %s1616_s3 = inlined_call_operand.vmem [shape: f32[16,1], index: 3, kind: input, shape index: {}]   ;;  %s1617_s4 = inlined_call_operand.hbm [shape: f32[16,2048], index: 4, kind: output, shape index: {}]  }
   0x1   :  { %s9_s17 = sshll.u32 %s1613_s0, 4  ;;  %s10_s17 = int_to_ptr.vmem [resolvable:$true] %s9_s17 }
   0x2   :  { %s1084_s18 = scalar_lea.vmem %s10_s17, 16  ;;  %p1089_p1 = scmp.lt.s32.totalorder %s10_s17, %s10_s17 }
   0x3   :  { %p1085_p0 = scmp.ne.s32.totalorder %s10_s17, %s1084_s18  ;;  %p1090_p2 = scmp.lt.s32.totalorder %s1084_s18, %s1084_s18 }
   0x5   :  { %p1091_p3 = por %p1090_p2, %p1089_p1 }
   0x7   :  { %p1092_p4 = pnand %p1091_p3, %p1085_p0 }
   0x9   :  { %1095 = shalt.err (!%p1092_p4)  }
   0xa   :  { %s1142_s19 = smov [#allocation4]  }
   0xb   :  { %12 = dma.vmem_to_smem %s10_s17, 16, %s1142_s19, [#allocation3] }
   0xc   :  { %1136 = dma.done.wait [#allocation3], 16 }
   0xd   :  { %1137 = vsyncadd [#allocation3], 4294967280 }
   0xe   :  { %14 = sfence }
   0xf   :  { %15 = vsyncpa [#allocation6], 0 }
  0x10   :  { %16 = vsyncpa [#allocation7], 0  ;;  %s1143_s20 = smov [#allocation5]  }
  0x11   :  { %s22_s21 = sshll.u32 %s1143_s20, 4  ;;  %s23_s21 = int_to_ptr.vmem [resolvable:$true] %s22_s21 }
  0x12   :  { %s1104_s22 = scalar_lea.vmem %s23_s21, 4096  ;;  %p1109_p6 = scmp.lt.s32.totalorder %s23_s21, %s23_s21 }
  0x13   :  { %p1105_p5 = scmp.ne.s32.totalorder %s23_s21, %s1104_s22  ;;  %p1110_p7 = scmp.lt.s32.totalorder %s1104_s22, %s1104_s22 }
  0x15   :  { %p1111_p8 = por %p1110_p7, %p1109_p6 }
  0x17   :  { %p1112_p9 = pnand %p1111_p8, %p1105_p5 }
  0x19   :  { %1115 = shalt.err (!%p1112_p9)
}
  0x1a   :  { %s1144_s0 = smov 2048   ;;  %s1145_s23 = smov 128  }
  0x1b   :  { %28 = dma.hbm_to_vmem [thread:$0]  %s1614_s1, 4096, %s23_s21, [#allocation6], %s1144_s0, %s1144_s0, %s1145_s23  }
  0x1c   :  { %1138 = dma.done.wait [#allocation6], 4096  }
  0x1d   :  { %1139 = vsyncadd [#allocation6], 4294963200  ;;  %s37_s26 = sld [smem:[#allocation4]]  ;;  %v1190_v0 = vld [vmem:[#allocation5] sm:$0xff]  ;;  %v1192_v1 = vld [vmem:[#allocation5 + $0x8] sm:$0xff] }
  0x1e   :  { %s926_s27 = sld [smem:[#allocation4 + $0x1]]  ;;  %v1194_v2 = vld [vmem:[#allocation5 + $0x10] sm:$0xff]  ;;  %v1196_v3 = vld [vmem:[#allocation5 + $0x18] sm:$0xff]  ;;  %v515_v4 = vmul.f32 %v1190_v0, %v1190_v0  ;;  %v516_v5 = vmul.f32 %v1192_v1, %v1192_v1  ;;  %v1204_v7 = vld [vmem:[#allocation5 + $0x20] sm:$0xff] }
  0x1f   :  { %s1182_s28 = sld [smem:[#allocation4 + $0x2]]  ;;  %v517_v6 = vmul.f32 %v1194_v2, %v1194_v2  ;;  %v518_v8 = vmul.f32 %v1196_v3, %v1196_v3  ;;  %v1211_v10 = vld [vmem:[#allocation5 + $0x28] sm:$0xff]  ;;  %v1214_v11 = vld [vmem:[#allocation5 + $0x30] sm:$0xff]  ;;  %v519_v12 = vmul.f32 %v1204_v7, %v1204_v7  ;;  %v467_v15 = vld [vmem:[#allocation5 + $0x80] sm:$0xff] }
  0x20   :  { %s1184_s29 = sld [smem:[#allocation4 + $0x3]]  ;;  %v547_v9 = vadd.f32 %v516_v5, %v515_v4  ;;  %v1222_v16 = vld [vmem:[#allocation5 + $0x38] sm:$0xff]  ;;  %v520_v19 = vmul.f32 %v1211_v10, %v1211_v10  ;;  %v531_v27 = vmul.f32 %v467_v15, %v467_v15  ;;  %v521_v28 = vmul.f32 %v1214_v11, %v1214_v11  ;;  %v1229_v32 = vld [vmem:[#allocation5 + $0x88] sm:$0xff]  ;;  %v1231_v33 = vld [vmem:[#allocation5 + $0x40] sm:$0xff] }
  0x21   :  { %s1186_s30 = sld [smem:[#allocation4 + $0x4]]  ;;  %1634 = vst [vmem:[#allocation12_spill] sm:$0xff] %v1229_v32  ;;  %v1234_v35 = vld [vmem:[#allocation5 + $0x90] sm:$0xff]  ;;  %v1236_v36 = vld [vmem:[#allocation5 + $0x98] sm:$0xff]  ;;  %v532_v37 = vmul.f32 %v1229_v32, %v1229_v32  ;;  %v1240_v38 = vld [vmem:[#allocation5 + $0x48] sm:$0xff]  ;;  %v522_v39 = vmul.f32 %v1222_v16, %v1222_v16  ;;  %v523_v49 = vmul.f32 %v1231_v33, %v1231_v33 }
  0x22   :  { %s1188_s5 = sld [smem:[#allocation4 + $0x5]]  ;;  %v548_v13 = vadd.f32 %v547_v9, %v517_v6  ;;  %1635 = vst [vmem:[#allocation13_spill] sm:$0xff] %v1234_v35  ;;  %1636 = vst [vmem:[#allocation14_spill] sm:$0xff] %v1236_v36  ;;  %v1247_v41 = vld [vmem:[#allocation5 + $0xa0] sm:$0xff]  ;;  %v1249_v42 = vld [vmem:[#allocation5 + $0xa8] sm:$0xff]  ;;  %v533_v43 = vmul.f32 %v1234_v35, %v1234_v35  ;;  %v534_v47 = vmul.f32 %v1236_v36, %v1236_v36 }
  0x23   :  { %s38_s6 = sshra.s32 %s37_s26, 3  ;;  %s41_s1 = sand.u32 7, %s37_s26  ;;  %1637 = vst [vmem:[#allocation15_spill] sm:$0xff] %v1247_v41  ;;  %1638 = vst [vmem:[#allocation16_spill] sm:$0xff] %v1249_v42  ;;  %v1253_v44 = vld [vmem:[#allocation5 + $0x50] sm:$0xff]  ;;  %v564_v48 = vadd.f32 %v532_v37, %v531_v27  ;;  %v535_v58 = vmul.f32 %v1247_v41, %v1247_v41  ;;  %v524_v60 = vmul.f32 %v1240_v38, %v1240_v38  ;;  %v1268_v5 = vld [vmem:[#allocation5 + $0x58] sm:$0xff] }
  0x24   :  { %s1031_s7 = sshll.u32 %s38_s6, 7  ;;  %s63_s8 = sshra.s32 %s926_s27, 3  ;;  %v549_v20 = vadd.f32 %v548_v13, %v518_v8  ;;  %v1262_v54 = vld [vmem:[#allocation5 + $0xb0] sm:$0xff]  ;;  %v536_v8 = vmul.f32 %v1249_v42, %v1249_v42  ;;  %v1279_v15 = vld [vmem:[#allocation5 + $0x60] sm:$0xff] }
  0x25   :  { %s44_s9 = sadd.s32 %s1031_s7, %s41_s1  ;;  %s66_s10 = sand.u32 7, %s926_s27  ;;  %1639 = vst [vmem:[#allocation17_spill] sm:$0xff] %v1262_v54  ;;  %v565_v59 = vadd.f32 %v564_v48, %v533_v43 }
  0x26   :  { %s45_s13 = scalar_lea.vmem %s1615_s2, %s44_s9  ;;  %s1033_s14 = sshll.u32 %s63_s8, 7  ;;  %v550_v29 = vadd.f32 %v549_v20, %v519_v12  ;;  %v525_v12 = vmul.f32 %v1253_v44, %v1253_v44  ;;  %v526_v20 = vmul.f32 %v1268_v5, %v1268_v5 }
  0x27   :  { %s69_s15 = sadd.s32 %s1033_s14, %s66_s10  ;;  %s89_s16 = sshra.s32 %s1182_s28, 3  ;;  %v46_v14 = vld [vmem:[%s45_s13] ss:$8 sm:$0xf]  ;;  %v566_v9 = vadd.f32 %v565_v59, %v534_v47 }
  0x28   :  { %s70_s19 = scalar_lea.vmem %s1615_s2, %s69_s15  ;;  %s92_s20 = sand.u32 7, %s1182_s28  ;;  %v47_v17 = vld [vmem:[%s45_s13] ss:$8 sm:$0xf0]  ;;  %v551_v40 = vadd.f32 %v550_v29, %v520_v19  ;;  %v527_v29 = vmul.f32 %v1279_v15, %v1279_v15 }
  0x29   :  { %v924_v18 = vld [vmem:[%s45_s13 + $0x40] ss:$8 sm:$0xf]  ;;  %v48_v21 = vor.u32 %v47_v17, %v46_v14  ;;  %s1035_s21 = sshll.u32 %s89_s16, 7  ;;  %s115_s22 = sshra.s32 %s1184_s29, 3  ;;  %v537_v17 = vmul.f32 %v1262_v54, %v1262_v54 }
  0x2a   :  { %v925_v22 = vld [vmem:[%s45_s13 + $0x40] ss:$8 sm:$0xf0]  ;;  %s95_s24 = sadd.s32 %s1035_s21, %s92_s20  ;;  %s118_s25 = sand.u32 7, %s1184_s29  ;;  %v552_v50 = vadd.f32 %v551_v40, %v521_v28 }
  0x2b   :  { %v71_v23 = vld [vmem:[%s70_s19] ss:$8 sm:$0xf]  ;;  %v55_v24 = vor.u32 %v925_v22, %v924_v18  ;;  %56 = vst [vmem:[#allocation2] ss:$8 sm:$0xf] %v48_v21  ;;  %s96_s28 = scalar_lea.vmem %s1615_s2, %s95_s24  ;;  %v567_v18 = vadd.f32 %v566_v9, %v535_v58 }
  0x2c   :  { %v72_v25 = vld [vmem:[%s70_s19] ss:$8 sm:$0xf0]  ;;  %57 = vst [vmem:[#allocation2] ss:$8 sm:$0xf0] %v48_v21  ;;  %v553_v61 = vadd.f32 %v552_v50, %v522_v39 }
  0x2d   :  { %v931_v26 = vld [vmem:[%s70_s19 + $0x40] ss:$8 sm:$0xf]  ;;  %v73_v30 = vor.u32 %v72_v25, %v71_v23  ;;  %59 = vst [vmem:[#allocation2 + $0x40] ss:$8 sm:$0xf] %v55_v24  ;;  %v568_v28 = vadd.f32 %v567_v18, %v536_v8 }
  0x2e   :  { %v932_v31 = vld [vmem:[%s70_s19 + $0x40] ss:$8 sm:$0xf0]  ;;  %60 = vst [vmem:[#allocation2 + $0x40] ss:$8 sm:$0xf0] %v55_v24  ;;  %v554_v13 = vadd.f32 %v553_v61, %v523_v49 }
  0x2f   :  { %v80_v34 = vor.u32 %v932_v31, %v931_v26  ;;  %82 = vst [vmem:[#allocation2 + $0x1] ss:$8 sm:$0xf] %v73_v30  ;;  %83 = vst [vmem:[#allocation2 + $0x1] ss:$8 sm:$0xf0] %v73_v30  ;;  %v569_v47 = vadd.f32 %v568_v28, %v537_v17 }
  0x30   :  { %s1037_s29 = sshll.u32 %s115_s22, 7  ;;  %v97_v45 = vld [vmem:[%s96_s28] ss:$8 sm:$0xf]  ;;  %s141_s9 = sshra.s32 %s1186_s30, 3  ;;  %v555_v21 = vadd.f32 %v554_v13, %v524_v60 }
  0x31   :  { %85 = vst [vmem:[#allocation2 + $0x41] ss:$8 sm:$0xf] %v80_v34  ;;  %86 = vst [vmem:[#allocation2 + $0x41] ss:$8 sm:$0xf0] %v80_v34  ;;  %s121_s6 = sadd.s32 %s1037_s29, %s118_s25 }
  0x32   :  { %v98_v46 = vld [vmem:[%s96_s28] ss:$8 sm:$0xf0]  ;;  %s122_s8 = scalar_lea.vmem %s1615_s2, %s121_s6  ;;  %s144_s10 = sand.u32 7, %s1186_s30  ;;  %v556_v30 = vadd.f32 %v555_v21, %v525_v12 }
  0x33   :  { %v99_v51 = vor.u32 %v98_v46, %v97_v45  ;;  %v938_v52 = vld [vmem:[%s96_s28 + $0x40] ss:$8 sm:$0xf]  ;;  %s1039_s11 = sshll.u32 %s141_s9, 7  ;;  %s167_s12 = sshra.s32 %s1188_s5, 3 }
  0x34   :  { %v939_v53 = vld [vmem:[%s96_s28 + $0x40] ss:$8 sm:$0xf0]  ;;  %s147_s13 = sadd.s32 %s1039_s11, %s144_s10  ;;  %s170_s30 = sand.u32 7, %s1188_s5  ;;  %v557_v49 = vadd.f32 %v556_v30, %v526_v20 }
  0x35   :  { %v106_v55 = vor.u32 %v939_v53, %v938_v52  ;;  %v123_v56 = vld [vmem:[%s122_s8] ss:$8 sm:$0xf]  ;;  %108 = vst [vmem:[#allocation2 + $0x2] ss:$8 sm:$0xf] %v99_v51  ;;  %s148_s16 = scalar_lea.vmem %s1615_s2, %s147_s13 }
  0x36   :  { %v124_v57 = vld [vmem:[%s122_s8] ss:$8 sm:$0xf0]  ;;  %109 = vst [vmem:[#allocation2 + $0x2] ss:$8 sm:$0xf0] %v99_v51  ;;  %v558_v59 = vadd.f32 %v557_v49, %v527_v29 }
  0x37   :  { %v125_v62 = vor.u32 %v124_v57, %v123_v56  ;;  %v945_v63 = vld [vmem:[%s122_s8 + $0x40] ss:$8 sm:$0xf]  ;;  %111 = vst [vmem:[#allocation2 + $0x42] ss:$8 sm:$0xf] %v106_v55 }
  0x38   :  { %v946_v4 = vld [vmem:[%s122_s8 + $0x40] ss:$8 sm:$0xf0]  ;;  %112 = vst [vmem:[#allocation2 + $0x42] ss:$8 sm:$0xf0] %v106_v55 }
  0x39   :  { %v132_v6 = vor.u32 %v946_v4, %v945_v63  ;;  %134 = vst [vmem:[#allocation2 + $0x3] ss:$8 sm:$0xf] %v125_v62  ;;  %135 = vst [vmem:[#allocation2 + $0x3] ss:$8 sm:$0xf0] %v125_v62 }
  0x3a   :  { %v1277_v14 = vld [vmem:[#allocation5 + $0xb8] sm:$0xff]  ;;  %v1284_v19 = vld [vmem:[#allocation5 + $0x68] sm:$0xff]  ;;  %s1041_s17 = sshll.u32 %s167_s12, 7  ;;  %v1291_v22 = vld [vmem:[#allocation5 + $0xc0] sm:$0xff]  ;;  %s1312_s21 = sld [smem:[#allocation4 + $0x6]] }
  0x3b   :  { %1640 = vst [vmem:[#allocation18_spill] sm:$0xff] %v1277_v14  ;;  %137 = vst [vmem:[#allocation2 + $0x43] ss:$8 sm:$0xf] %v132_v6  ;;  %v1293_v23 = vld [vmem:[#allocation5 + $0xc8] sm:$0xff]  ;;  %v1295_v24 = vld [vmem:[#allocation5 + $0x70] sm:$0xff]  ;;  %s173_s5 = sadd.s32 %s1041_s17, %s170_s30  ;;  %v538_v27 = vmul.f32 %v1277_v14, %v1277_v14  ;;  %v539_v46 = vmul.f32 %v1291_v22, %v1291_v22  ;;  %v528_v48 = vmul.f32 %v1284_v19, %v1284_v19 }
  0x3c   :  { %138 = vst [vmem:[#allocation2 + $0x43] ss:$8 sm:$0xf0] %v132_v6  ;;  %1641 = vst [vmem:[#allocation19_spill] sm:$0xff] %v1291_v22  ;;  %s174_s20 = scalar_lea.vmem %s1615_s2, %s173_s5  ;;  %v1304_v39 = vld [vmem:[#allocation5 + $0xd0] sm:$0xff]  ;;  %v1310_v53 = vld [vmem:[#allocation5 + $0x78] sm:$0xff]  ;;  %v540_v56 = vmul.f32 %v1293_v23, %v1293_v23  ;;  %v529_v58 = vmul.f32 %v1295_v24, %v1295_v24 }
  0x3d   :  { %1642 = vst [vmem:[#allocation20_spill] sm:$0xff] %v1293_v23  ;;  %v149_v25 = vld [vmem:[%s148_s16] ss:$8 sm:$0xf]  ;;  %1643 = vst [vmem:[#allocation21_spill] sm:$0xff] %v1304_v39  ;;  %v570_v57 = vadd.f32 %v569_v47, %v538_v27  ;;  %s1318_s22 = sld [smem:[#allocation4 + $0x7]]  ;;  %v541_v61 = vmul.f32 %v1304_v39, %v1304_v39  ;;  %v530_v63 = vmul.f32 %v1310_v53, %v1310_v53 }
  0x3e   :  { %v150_v26 = vld [vmem:[%s148_s16] ss:$8 sm:$0xf0]  ;;  %s1324_s24 = sld [smem:[#allocation4 + $0x8]]  ;;  %v559_v4 = vadd.f32 %v558_v59, %v528_v48 }
  0x3f   :  { %v151_v31 = vor.u32 %v150_v26, %v149_v25  ;;  %v952_v34 = vld [vmem:[%s148_s16 + $0x40] ss:$8 sm:$0xf]  ;;  %v571_v62 = vadd.f32 %v570_v57, %v539_v46  ;;  %s1330_s25 = sld [smem:[#allocation4 + $0x9]] }
  0x40   :  { %v953_v37 = vld [vmem:[%s148_s16 + $0x40] ss:$8 sm:$0xf0]  ;;  %s1334_s26 = sld [smem:[#allocation4 + $0xa]]  ;;  %v560_v12 = vadd.f32 %v559_v4, %v529_v58  ;;  %s193_s28 = sshra.s32 %s1312_s21, 3 }
  0x41   :  { %v158_v40 = vor.u32 %v953_v37, %v952_v34  ;;  %v175_v43 = vld [vmem:[%s174_s20] ss:$8 sm:$0xf]  ;;  %160 = vst [vmem:[#allocation2 + $0x4] ss:$8 sm:$0xf] %v151_v31  ;;  %v572_v9 = vadd.f32 %v571_v62, %v540_v56 }
  0x42   :  { %v176_v45 = vld [vmem:[%s174_s20] ss:$8 sm:$0xf0]  ;;  %161 = vst [vmem:[#allocation2 + $0x4] ss:$8 sm:$0xf0] %v151_v31  ;;  %v561_v20 = vadd.f32 %v560_v12, %v530_v63 }
  0x43   :  { %v177_v50 = vor.u32 %v176_v45, %v175_v43  ;;  %v959_v51 = vld [vmem:[%s174_s20 + $0x40] ss:$8 sm:$0xf]  ;;  %163 = vst [vmem:[#allocation2 + $0x44] ss:$8 sm:$0xf] %v158_v40  ;;  %v573_v18 = vadd.f32 %v572_v9, %v541_v61 }
  0x44   :  { %v960_v52 = vld [vmem:[%s174_s20 + $0x40] ss:$8 sm:$0xf0]  ;;  %164 = vst [vmem:[#allocation2 + $0x44] ss:$8 sm:$0xf0] %v158_v40  ;;  %562 = vadd.xlane.f32.xlu0 %v561_v20 }
  0x45   :  { %v184_v55 = vor.u32 %v960_v52, %v959_v51  ;;  %186 = vst [vmem:[#allocation2 + $0x5] ss:$8 sm:$0xf] %v177_v50  ;;  %187 = vst [vmem:[#allocation2 + $0x5] ss:$8 sm:$0xf0] %v177_v50 }
  0x46   :  { %v1320_v60 = vld [vmem:[#allocation5 + $0xd8] sm:$0xff]  ;;  %v1328_v6 = vld [vmem:[#allocation5 + $0xe0] sm:$0xff]  ;;  %v1336_v13 = vld [vmem:[#allocation5 + $0xe8] sm:$0xff]  ;;  %s1338_s27 = sld [smem:[#allocation4 + $0xb]]  ;;  %s196_s29 = sand.u32 7, %s1312_s21 }
  0x47   :  { %1644 = vst [vmem:[#allocation22_spill] sm:$0xff] %v1320_v60  ;;  %189 = vst [vmem:[#allocation2 + $0x45] ss:$8 sm:$0xf] %v184_v55  ;;  %v542_v8 = vmul.f32 %v1320_v60, %v1320_v60  ;;  %v543_v17 = vmul.f32 %v1328_v6, %v1328_v6  ;;  %s1043_s6 = sshll.u32 %s193_s28, 7  ;;  %s219_s1 = sshra.s32 %s1318_s22, 3  ;;  %v544_v25 = vmul.f32 %v1336_v13, %v1336_v13 }
  0x48   :  { %190 = vst [vmem:[#allocation2 + $0x45] ss:$8 sm:$0xf0] %v184_v55  ;;  %1645 = vst [vmem:[#allocation23_spill] sm:$0xff] %v1328_v6  ;;  %v1345_v21 = vld [vmem:[#allocation5 + $0xf0] sm:$0xff]  ;;  %s199_s7 = sadd.s32 %s1043_s6, %s196_s29  ;;  %s222_s8 = sand.u32 7, %s1318_s22 }
  0x49   :  { %1646 = vst [vmem:[#allocation24_spill] sm:$0xff] %v1336_v13  ;;  %1647 = vst [vmem:[#allocation25_spill] sm:$0xff] %v1345_v21  ;;  %v574_v26 = vadd.f32 %v573_v18, %v542_v8  ;;  %s200_s11 = scalar_lea.vmem %s1615_s2, %s199_s7  ;;  %s1045_s12 = sshll.u32 %s219_s1, 7  ;;  %v1353_v27 = vld [vmem:[#allocation5 + $0xf8] sm:$0xff]  ;;  %v545_v30 = vmul.f32 %v1345_v21, %v1345_v21 }
  0x4a   :  { %1648 = vst [vmem:[#allocation26_spill] sm:$0xff] %v1353_v27  ;;  %v201_v28 = vld [vmem:[%s200_s11] ss:$8 sm:$0xf]  ;;  %s225_s13 = sadd.s32 %s1045_s12, %s222_s8  ;;  %v546_v47 = vmul.f32 %v1353_v27, %v1353_v27  ;;  %s245_s16 = sshra.s32 %s1324_s24, 3 }
  0x4b   :  { %v202_v29 = vld [vmem:[%s200_s11] ss:$8 sm:$0xf0]  ;;  %v575_v31 = vadd.f32 %v574_v26, %v543_v17  ;;  %s226_s15 = scalar_lea.vmem %s1615_s2, %s225_s13  ;;  %s248_s17 = sand.u32 7, %s1324_s24 }
  0x4c   :  { %v203_v34 = vor.u32 %v202_v29, %v201_v28  ;;  %v966_v37 = vld [vmem:[%s200_s11 + $0x40] ss:$8 sm:$0xf]  ;;  %s1047_s5 = sshll.u32 %s245_s16, 7  ;;  %s271_s18 = sshra.s32 %s1330_s25, 3 }
  0x4d   :  { %v967_v40 = vld [vmem:[%s200_s11 + $0x40] ss:$8 sm:$0xf0]  ;;  %v576_v48 = vadd.f32 %v575_v31, %v544_v25  ;;  %s251_s19 = sadd.s32 %s1047_s5, %s248_s17  ;;  %s274_s20 = sand.u32 7, %s1330_s25 }
  0x4e   :  { %v210_v43 = vor.u32 %v967_v40, %v966_v37  ;;  %v227_v45 = vld [vmem:[%s226_s15] ss:$8 sm:$0xf]  ;;  %212 = vst [vmem:[#allocation2 + $0x6] ss:$8 sm:$0xf] %v203_v34  ;;  %s252_s28 = scalar_lea.vmem %s1615_s2, %s251_s19 }
  0x4f   :  { %v228_v46 = vld [vmem:[%s226_s15] ss:$8 sm:$0xf0]  ;;  %213 = vst [vmem:[#allocation2 + $0x6] ss:$8 sm:$0xf0] %v203_v34  ;;  %v577_v55 = vadd.f32 %v576_v48, %v545_v30 }
  0x50   :  { %v229_v49 = vor.u32 %v228_v46, %v227_v45  ;;  %v973_v50 = vld [vmem:[%s226_s15 + $0x40] ss:$8 sm:$0xf]  ;;  %215 = vst [vmem:[#allocation2 + $0x46] ss:$8 sm:$0xf] %v210_v43 }
  0x51   :  { %v974_v51 = vld [vmem:[%s226_s15 + $0x40] ss:$8 sm:$0xf0]  ;;  %216 = vst [vmem:[#allocation2 + $0x46] ss:$8 sm:$0xf0] %v210_v43  ;;  %v578_v56 = vadd.f32 %v577_v55, %v546_v47 }
  0x52   :  { %v236_v52 = vor.u32 %v974_v51, %v973_v50  ;;  %238 = vst [vmem:[#allocation2 + $0x7] ss:$8 sm:$0xf] %v229_v49  ;;  %239 = vst [vmem:[#allocation2 + $0x7] ss:$8 sm:$0xf0] %v229_v49 }
  0x53   :  { %s1049_s29 = sshll.u32 %s271_s18, 7  ;;  %579 = vadd.xlane.f32.xlu0 %v578_v56  ;;  %v253_v57 = vld [vmem:[%s252_s28] ss:$8 sm:$0xf]  ;;  %s297_s25 = sshra.s32 %s1334_s26, 3 }
  0x54   :  { %241 = vst [vmem:[#allocation2 + $0x47] ss:$8 sm:$0xf] %v236_v52  ;;  %242 = vst [vmem:[#allocation2 + $0x47] ss:$8 sm:$0xf0] %v236_v52  ;;  %s277_s6 = sadd.s32 %s1049_s29, %s274_s20 }
  0x55   :  { %v254_v58 = vld [vmem:[%s252_s28] ss:$8 sm:$0xf0]  ;;  %s278_s7 = scalar_lea.vmem %s1615_s2, %s277_s6  ;;  %s300_s8 = sand.u32 7, %s1334_s26 }
  0x56   :  { %v255_v59 = vor.u32 %v254_v58, %v253_v57  ;;  %v980_v61 = vld [vmem:[%s252_s28 + $0x40] ss:$8 sm:$0xf]  ;;  %s1051_s9 = sshll.u32 %s297_s25, 7  ;;  %s323_s10 = sshra.s32 %s1338_s27, 3 }
  0x57   :  { %v981_v62 = vld [vmem:[%s252_s28 + $0x40] ss:$8 sm:$0xf0]  ;;  %s303_s26 = sadd.s32 %s1051_s9, %s300_s8  ;;  %s326_s11 = sand.u32 7, %s1338_s27 }
  0x58   :  { %v262_v63 = vor.u32 %v981_v62, %v980_v61  ;;  %v279_v4 = vld [vmem:[%s278_s7] ss:$8 sm:$0xf]  ;;  %264 = vst [vmem:[#allocation2 + $0x80] ss:$8 sm:$0xf] %v255_v59  ;;  %s304_s30 = scalar_lea.vmem %s1615_s2, %s303_s26 }
  0x59   :  { %v280_v8 = vld [vmem:[%s278_s7] ss:$8 sm:$0xf0]  ;;  %265 = vst [vmem:[#allocation2 + $0x80] ss:$8 sm:$0xf0] %v255_v59 }
  0x5a   :  { %v281_v9 = vor.u32 %v280_v8, %v279_v4  ;;  %v987_v12 = vld [vmem:[%s278_s7 + $0x40] ss:$8 sm:$0xf]  ;;  %267 = vst [vmem:[#allocation2 + $0xc0] ss:$8 sm:$0xf] %v262_v63 }
  0x5b   :  { %v988_v17 = vld [vmem:[%s278_s7 + $0x40] ss:$8 sm:$0xf0]  ;;  %268 = vst [vmem:[#allocation2 + $0xc0] ss:$8 sm:$0xf0] %v262_v63 }
  0x5c   :  { %v1372_v18 = vld [vmem:[#allocation2] sm:$0xff]  ;;  %v1374_v20 = vld [vmem:[#allocation2 + $0x8] sm:$0xff]  ;;  %v1376_v25 = vld [vmem:[#allocation2 + $0x10] sm:$0xff]  ;;  %v288_v26 = vor.u32 %v988_v17, %v987_v12  ;;  %290 = vst [vmem:[#allocation2 + $0x81] ss:$8 sm:$0xf] %v281_v9 }
  0x5d   :  { %v1380_v28 = vld [vmem:[#allocation2 + $0x18] sm:$0xff]  ;;  %v581_v29 = vmul.f32 %v1372_v18, %v1372_v18  ;;  %v582_v30 = vmul.f32 %v1374_v20, %v1374_v20  ;;  %v583_v31 = vmul.f32 %v1376_v25, %v1376_v25  ;;  %291 = vst [vmem:[#allocation2 + $0x81] ss:$8 sm:$0xf0] %v281_v9  ;;  %v1389_v34 = vld [vmem:[#allocation2 + $0x20] sm:$0xff]  ;;  %s1053_s14 = sshll.u32 %s323_s10, 7 }
  0x5e   :  { %293 = vst [vmem:[#allocation2 + $0xc1] ss:$8 sm:$0xf] %v288_v26  ;;  %294 = vst [vmem:[#allocation2 + $0xc1] ss:$8 sm:$0xf0] %v288_v26  ;;  %v584_v37 = vmul.f32 %v1380_v28, %v1380_v28  ;;  %s329_s15 = sadd.s32 %s1053_s14, %s326_s11  ;;  %v585_v46 = vmul.f32 %v1389_v34, %v1389_v34 }
  0x5f   :  { %v613_v40 = vadd.f32 %v582_v30, %v581_v29  ;;  %v1397_v43 = vld [vmem:[#allocation2 + $0x28] sm:$0xff]  ;;  %s1399_s16 = sld [smem:[#allocation4 + $0xc]]  ;;  %v1401_v45 = vld [vmem:[#allocation2 + $0x30] sm:$0xff]  ;;  %s330_s5 = scalar_lea.vmem %s1615_s2, %s329_s15  ;;  %v1410_v49 = vld [vmem:[#allocation2 + $0x38] sm:$0xff] }
  0x60   :  { %v305_v48 = vld [vmem:[%s304_s30] ss:$8 sm:$0xf]  ;;  %s1408_s18 = sld [smem:[#allocation4 + $0xd]]  ;;  %v586_v52 = vmul.f32 %v1397_v43, %v1397_v43  ;;  %v587_v63 = vmul.f32 %v1401_v45, %v1401_v45  ;;  %v588_v26 = vmul.f32 %v1410_v49, %v1410_v49 }
  0x61   :  { %v614_v47 = vadd.f32 %v613_v40, %v583_v31  ;;  %v306_v50 = vld [vmem:[%s304_s30] ss:$8 sm:$0xf0]  ;;  %s1416_s19 = sld [smem:[#allocation4 + $0xe]] }
  0x62   :  { %v994_v51 = vld [vmem:[%s304_s30 + $0x40] ss:$8 sm:$0xf]  ;;  %v307_v56 = vor.u32 %v306_v50, %v305_v48 }
  0x63   :  { %v615_v55 = vadd.f32 %v614_v47, %v584_v37  ;;  %v995_v57 = vld [vmem:[%s304_s30 + $0x40] ss:$8 sm:$0xf0]  ;;  %s1450_s30 = sld [smem:[#allocation4 + $0xf]] }
  0x64   :  { %v331_v58 = vld [vmem:[%s330_s5] ss:$8 sm:$0xf]  ;;  %v314_v59 = vor.u32 %v995_v57, %v994_v51  ;;  %316 = vst [vmem:[#allocation2 + $0x82] ss:$8 sm:$0xf] %v307_v56 }
  0x65   :  { %v332_v61 = vld [vmem:[%s330_s5] ss:$8 sm:$0xf0]  ;;  %v616_v4 = vadd.f32 %v615_v55, %v585_v46  ;;  %317 = vst [vmem:[#allocation2 + $0x82] ss:$8 sm:$0xf0] %v307_v56 }
  0x66   :  { %v1001_v62 = vld [vmem:[%s330_s5 + $0x40] ss:$8 sm:$0xf]  ;;  %v333_v8 = vor.u32 %v332_v61, %v331_v58  ;;  %319 = vst [vmem:[#allocation2 + $0xc2] ss:$8 sm:$0xf] %v314_v59 }
  0x67   :  { %v1002_v9 = vld [vmem:[%s330_s5 + $0x40] ss:$8 sm:$0xf0]  ;;  %320 = vst [vmem:[#allocation2 + $0xc2] ss:$8 sm:$0xf0] %v314_v59  ;;  %v617_v29 = vadd.f32 %v616_v4, %v586_v52 }
  0x68   :  { %v1418_v12 = vld [vmem:[#allocation2 + $0x40] sm:$0xff]  ;;  %v340_v17 = vor.u32 %v1002_v9, %v1001_v62  ;;  %s349_s20 = sshra.s32 %s1399_s16, 3  ;;  %s352_s21 = sand.u32 7, %s1399_s16  ;;  %342 = vst [vmem:[#allocation2 + $0x83] ss:$8 sm:$0xf] %v333_v8 }
  0x69   :  { %343 = vst [vmem:[#allocation2 + $0x83] ss:$8 sm:$0xf0] %v333_v8  ;;  %s1055_s22 = sshll.u32 %s349_s20, 7  ;;  %s375_s28 = sshra.s32 %s1408_s18, 3  ;;  %v1425_v30 = vld [vmem:[#allocation2 + $0x48] sm:$0xff]  ;;  %v589_v37 = vmul.f32 %v1418_v12, %v1418_v12  ;;  %v618_v40 = vadd.f32 %v617_v29, %v587_v63 }
  0x6a   :  { %345 = vst [vmem:[#allocation2 + $0xc3] ss:$8 sm:$0xf] %v340_v17  ;;  %346 = vst [vmem:[#allocation2 + $0xc3] ss:$8 sm:$0xf0] %v340_v17  ;;  %s355_s29 = sadd.s32 %s1055_s22, %s352_s21  ;;  %v590_v50 = vmul.f32 %v1425_v30, %v1425_v30 }
  0x6b   :  { %s378_s6 = sand.u32 7, %s1408_s18  ;;  %v1428_v31 = vld [vmem:[#allocation2 + $0x50] sm:$0xff]  ;;  %s356_s7 = scalar_lea.vmem %s1615_s2, %s355_s29  ;;  %v1435_v46 = vld [vmem:[#allocation2 + $0x58] sm:$0xff]  ;;  %v619_v51 = vadd.f32 %v618_v40, %v588_v26  ;;  %v1444_v9 = vld [vmem:[#allocation2 + $0x60] sm:$0xff] }
  0x6c   :  { %s1057_s25 = sshll.u32 %s375_s28, 7  ;;  %v357_v47 = vld [vmem:[%s356_s7] ss:$8 sm:$0xf]  ;;  %v591_v61 = vmul.f32 %v1428_v31, %v1428_v31  ;;  %s401_s11 = sshra.s32 %s1416_s19, 3  ;;  %v592_v26 = vmul.f32 %v1435_v46, %v1435_v46 }
  0x6d   :  { %v358_v48 = vld [vmem:[%s356_s7] ss:$8 sm:$0xf0]  ;;  %s381_s8 = sadd.s32 %s1057_s25, %s378_s6  ;;  %v620_v62 = vadd.f32 %v619_v51, %v589_v37  ;;  %s404_s12 = sand.u32 7, %s1416_s19 }
  0x6e   :  { %v359_v52 = vor.u32 %v358_v48, %v357_v47  ;;  %v1008_v55 = vld [vmem:[%s356_s7 + $0x40] ss:$8 sm:$0xf]  ;;  %s382_s26 = scalar_lea.vmem %s1615_s2, %s381_s8  ;;  %s1059_s13 = sshll.u32 %s401_s11, 7  ;;  %v593_v47 = vmul.f32 %v1444_v9, %v1444_v9 }
  0x6f   :  { %v1009_v56 = vld [vmem:[%s356_s7 + $0x40] ss:$8 sm:$0xf0]  ;;  %v621_v29 = vadd.f32 %v620_v62, %v590_v50  ;;  %s407_s14 = sadd.s32 %s1059_s13, %s404_s12  ;;  %s427_s17 = sshra.s32 %s1450_s30, 3 }
  0x70   :  { %v366_v57 = vor.u32 %v1009_v56, %v1008_v55  ;;  %v383_v58 = vld [vmem:[%s382_s26] ss:$8 sm:$0xf]  ;;  %368 = vst [vmem:[#allocation2 + $0x84] ss:$8 sm:$0xf] %v359_v52  ;;  %s408_s27 = scalar_lea.vmem %s1615_s2, %s407_s14 }
  0x71   :  { %v384_v59 = vld [vmem:[%s382_s26] ss:$8 sm:$0xf0]  ;;  %369 = vst [vmem:[#allocation2 + $0x84] ss:$8 sm:$0xf0] %v359_v52  ;;  %v622_v48 = vadd.f32 %v621_v29, %v591_v61 }
  0x72   :  { %v385_v63 = vor.u32 %v384_v59, %v383_v58  ;;  %v1015_v4 = vld [vmem:[%s382_s26 + $0x40] ss:$8 sm:$0xf]  ;;  %371 = vst [vmem:[#allocation2 + $0xc4] ss:$8 sm:$0xf] %v366_v57 }
  0x73   :  { %v1016_v8 = vld [vmem:[%s382_s26 + $0x40] ss:$8 sm:$0xf0]  ;;  %372 = vst [vmem:[#allocation2 + $0xc4] ss:$8 sm:$0xf0] %v366_v57  ;;  %v623_v55 = vadd.f32 %v622_v48, %v592_v26 }
  0x74   :  { %v392_v17 = vor.u32 %v1016_v8, %v1015_v4  ;;  %394 = vst [vmem:[#allocation2 + $0x85] ss:$8 sm:$0xf] %v385_v63  ;;  %395 = vst [vmem:[#allocation2 + $0x85] ss:$8 sm:$0xf0] %v385_v63 }
  0x75   :  { %v1452_v37 = vld [vmem:[#allocation2 + $0x68] sm:$0xff]  ;;  %v1454_v40 = vld [vmem:[#allocation2 + $0x70] sm:$0xff]  ;;  %v1463_v59 = vld [vmem:[#allocation2 + $0x78] sm:$0xff]  ;;  %v624_v63 = vadd.f32 %v623_v55, %v593_v47  ;;  %s430_s5 = sand.u32 7, %s1450_s30  ;;  %s1061_s18 = sshll.u32 %s427_s17, 7 }
  0x76   :  { %397 = vst [vmem:[#allocation2 + $0xc5] ss:$8 sm:$0xf] %v392_v17  ;;  %398 = vst [vmem:[#allocation2 + $0xc5] ss:$8 sm:$0xf0] %v392_v17  ;;  %v594_v52 = vmul.f32 %v1452_v37, %v1452_v37  ;;  %v595_v61 = vmul.f32 %v1454_v40, %v1454_v40  ;;  %v596_v4 = vmul.f32 %v1463_v59, %v1463_v59  ;;  %s433_s19 = sadd.s32 %s1061_s18, %s430_s5 }
  0x77   :  { %v409_v50 = vld [vmem:[%s408_s27] ss:$8 sm:$0xf]  ;;  %s434_s22 = scalar_lea.vmem %s1615_s2, %s433_s19 }
  0x78   :  { %v410_v51 = vld [vmem:[%s408_s27] ss:$8 sm:$0xf0]  ;;  %v625_v8 = vadd.f32 %v624_v63, %v594_v52 }
  0x79   :  { %v411_v56 = vor.u32 %v410_v51, %v409_v50  ;;  %v1022_v57 = vld [vmem:[%s408_s27 + $0x40] ss:$8 sm:$0xf] }
  0x7a   :  { %v1023_v58 = vld [vmem:[%s408_s27 + $0x40] ss:$8 sm:$0xf0]  ;;  %v626_v17 = vadd.f32 %v625_v8, %v595_v61 }
  0x7b   :  { %v418_v62 = vor.u32 %v1023_v58, %v1022_v57  ;;  %420 = vst [vmem:[#allocation2 + $0x86] ss:$8 sm:$0xf] %v411_v56  ;;  %421 = vst [vmem:[#allocation2 + $0x86] ss:$8 sm:$0xf0] %v411_v56 }
  0x7c   :  { %v435_v26 = vld [vmem:[%s434_s22] ss:$8 sm:$0xf]  ;;  %v627_v51 = vadd.f32 %v626_v17, %v596_v4 }
  0x7d   :  { %423 = vst [vmem:[#allocation2 + $0xc6] ss:$8 sm:$0xf] %v418_v62  ;;  %424 = vst [vmem:[#allocation2 + $0xc6] ss:$8 sm:$0xf0] %v418_v62 }
  0x7e   :  { %v436_v29 = vld [vmem:[%s434_s22] ss:$8 sm:$0xf0]  ;;  %628 = vadd.xlane.f32.xlu1 %v627_v51 }
  0x7f   :  { %v437_v47 = vor.u32 %v436_v29, %v435_v26  ;;  %v1029_v48 = vld [vmem:[%s434_s22 + $0x40] ss:$8 sm:$0xf] }
  0x80   :  { %v1030_v50 = vld [vmem:[%s434_s22 + $0x40] ss:$8 sm:$0xf0] }
  0x81   :  { %v444_v55 = vor.u32 %v1030_v50, %v1029_v48  ;;  %446 = vst [vmem:[#allocation2 + $0x87] ss:$8 sm:$0xf] %v437_v47  ;;  %447 = vst [vmem:[#allocation2 + $0x87] ss:$8 sm:$0xf0] %v437_v47 }
  0x83   :  { %449 = vst [vmem:[#allocation2 + $0xc7] ss:$8 sm:$0xf] %v444_v55  ;;  %450 = vst [vmem:[#allocation2 + $0xc7] ss:$8 sm:$0xf0] %v444_v55 }
  0x88   :  { %v1474_v56 = vld [vmem:[#allocation2 + $0x80] sm:$0xff]  ;;  %v1476_v52 = vld [vmem:[#allocation2 + $0x88] sm:$0xff]  ;;  %v1478_v57 = vld [vmem:[#allocation2 + $0x90] sm:$0xff] }
  0x89   :  { %v1480_v58 = vld [vmem:[#allocation2 + $0x98] sm:$0xff]  ;;  %v597_v62 = vmul.f32 %v1474_v56, %v1474_v56  ;;  %v598_v61 = vmul.f32 %v1476_v52, %v1476_v52  ;;  %v599_v63 = vmul.f32 %v1478_v57, %v1478_v57  ;;  %v1488_v4 = vld [vmem:[#allocation2 + $0xa0] sm:$0xff]  ;;  %v1492_v26 = vld [vmem:[#allocation2 + $0xa8] sm:$0xff] }
  0x8a   :  { %v600_v8 = vmul.f32 %v1480_v58, %v1480_v58  ;;  %v601_v29 = vmul.f32 %v1488_v4, %v1488_v4  ;;  %v1496_v48 = vld [vmem:[#allocation2 + $0xb0] sm:$0xff]  ;;  %v602_v50 = vmul.f32 %v1492_v26, %v1492_v26  ;;  %v1500_v55 = vld [vmem:[#allocation2 + $0xb8] sm:$0xff]  ;;  %v1504_v13 = vld [vmem:[#allocation2 + $0xc0] sm:$0xff] }
  0x8b   :  { %v630_v17 = vadd.f32 %v598_v61, %v597_v62  ;;  %v603_v27 = vmul.f32 %v1496_v48, %v1496_v48  ;;  %v604_v62 = vmul.f32 %v1500_v55, %v1500_v55  ;;  %v1508_v6 = vld [vmem:[#allocation2 + $0xc8] sm:$0xff]  ;;  %v1512_v60 = vld [vmem:[#allocation2 + $0xd0] sm:$0xff]  ;;  %v1516_v39 = vld [vmem:[#allocation2 + $0xd8] sm:$0xff] }
  0x8c   :  { %v1520_v23 = vld [vmem:[#allocation2 + $0xe0] sm:$0xff]  ;;  %v1524_v22 = vld [vmem:[#allocation2 + $0xe8] sm:$0xff]  ;;  %v1528_v14 = vld [vmem:[#allocation2 + $0xf0] sm:$0xff] }
  0x8d   :  { %v631_v47 = vadd.f32 %v630_v17, %v599_v63  ;;  %v605_v63 = vmul.f32 %v1504_v13, %v1504_v13  ;;  %1649 = vst [vmem:[#allocation27_spill] sm:$0xff] %v1528_v14  ;;  %v1532_v54 = vld [vmem:[#allocation2 + $0xf8] sm:$0xff] }
  0x8f   :  { %v632_v51 = vadd.f32 %v631_v47, %v600_v8  ;;  %v606_v8 = vmul.f32 %v1508_v6, %v1508_v6 }
  0x91   :  { %v633_v21 = vadd.f32 %v632_v51, %v601_v29  ;;  %v607_v29 = vmul.f32 %v1512_v60, %v1512_v60 }
  0x93   :  { %v634_v61 = vadd.f32 %v633_v21, %v602_v50  ;;  %v608_v21 = vmul.f32 %v1516_v39, %v1516_v39 }
  0x95   :  { %v635_v17 = vadd.f32 %v634_v61, %v603_v27  ;;  %v609_v27 = vmul.f32 %v1520_v23, %v1520_v23 }
  0x97   :  { %v636_v47 = vadd.f32 %v635_v17, %v604_v62  ;;  %v610_v62 = vmul.f32 %v1524_v22, %v1524_v22 }
  0x99   :  { %v637_v51 = vadd.f32 %v636_v47, %v605_v63  ;;  %v611_v63 = vmul.f32 %v1528_v14, %v1528_v14 }
  0x9b   :  { %v638_v50 = vadd.f32 %v637_v51, %v606_v8  ;;  %v612_v8 = vmul.f32 %v1532_v54, %v1532_v54 }
  0x9d   :  { %v639_v61 = vadd.f32 %v638_v50, %v607_v29  ;;  %v1146_v29 = vmov 0  }
  0x9e   :  { %1069 = vset.pattern.permute.xlu0 %v1146_v29  ;;  %1070 = vset.pattern.permute.xlu1 %v1146_v29 }
  0x9f   :  { %v640_v17 = vadd.f32 %v639_v61, %v608_v21 }
  0xa1   :  { %v641_v47 = vadd.f32 %v640_v17, %v609_v27  ;;  %v659_v27 = vld [vmem:[%s1616_s3] sm:$0xff] }
  0xa3   :  { %v642_v51 = vadd.f32 %v641_v47, %v610_v62 }
  0xa5   :  { %v643_v42 = vadd.f32 %v642_v51, %v611_v63 }
  0xa7   :  { %v644_v41 = vadd.f32 %v643_v42, %v612_v8 }
  0xa9   :  { %645 = vadd.xlane.f32.xlu1 %v644_v41 }
  0xcd   :  { %v563_v50 = vpop.xlane.xlu0 %562 }
  0xce   :  { %1071 = vlog2.f32 %v563_v50  ;;  %v660_v50 = vld [vmem:[%s1616_s3 + $0x8] sm:$0xff]  ;;  %s1147_s3 = smov [#allocation8]  }
  0xcf   :  { %s780_s24 = sshll.u32 %s1147_s3, 4  ;;  %s781_s24 = int_to_ptr.vmem [resolvable:$true] %s780_s24 }
  0xd0   :  { %s1116_s1 = scalar_lea.vmem %s781_s24, 4096  ;;  %p1121_p11 = scmp.lt.s32.totalorder %s781_s24, %s781_s24 }
  0xd1   :  { %p1117_p10 = scmp.ne.s32.totalorder %s781_s24, %s1116_s1  ;;  %p1122_p12 = scmp.lt.s32.totalorder %s1116_s1, %s1116_s1 }
  0xd3   :  { %p1123_p13 = por %p1122_p12, %p1121_p11 }
  0xd5   :  { %p1124_p0 = pnand %p1123_p13, %p1117_p10 }
  0xdb   :  { %v1072_v21 = vpop.eup %1071 }
  0xdc   :  { %v648_v61 = vmul.f32 0.6931472, %v1072_v21  ;;  %v580_v63 = vpop.xlane.xlu0 %579 }
 0x107   :  { %v629_v36 = vpop.xlane.xlu1 %628 }
 0x108   :  { %1073 = vlog2.f32 %v629_v36 }
 0x115   :  { %v1074_v35 = vpop.eup %1073 }
 0x116   :  { %v652_v32 = vmul.f32 0.6931472, %v1074_v35 }
 0x118   :  { %v655_v14 = vsub.f32 %v648_v61, %v652_v32 }
 0x11a   :  { %v657_v62 = vmul.f32 4.3429446, %v655_v14 }
 0x11c   :  { %v661_v17 = vsub.f32 %v657_v62, %v659_v27 }
 0x11e   :  { %v663_v42 = vmul.f32 0.115129255, %v661_v17 }
 0x120   :  { %v665_v41 = vmul.f32 1.442695, %v663_v42 }
 0x122   :  { %1075 = vpow2.f32 %v665_v41 }
 0x123   :  { %1077 = vlog2.f32 %v580_v63 }
 0x12f   :  { %v1076_v8 = vpop.eup %1075 }
 0x130   :  { %671 = vperm.xlu0 %1069, %v1076_v8   ;;  %v1078_v36 = vpop.eup %1077 }
 0x131   :  { %v650_v51 = vmul.f32 0.6931472, %v1078_v36 }
 0x132   :  { %v646_v47 = vpop.xlane.xlu1 %645 }
 0x133   :  { %1079 = vlog2.f32 %v646_v47 }
 0x140   :  { %v1080_v29 = vpop.eup %1079 }
 0x141   :  { %v654_v35 = vmul.f32 0.6931472, %v1080_v29 }
 0x143   :  { %v656_v32 = vsub.f32 %v650_v51, %v654_v35 }
 0x145   :  { %v658_v14 = vmul.f32 4.3429446, %v656_v32 }
 0x147   :  { %v662_v21 = vsub.f32 %v658_v14, %v660_v50  ;;  %v1650_v14 = vld [vmem:[#allocation27_spill] sm:$0xff] }
 0x149   :  { %v664_v61 = vmul.f32 0.115129255, %v662_v21  ;;  %v1083_v21 = vld [vmem:[#allocation5 + $0x80] sm:$0xff] }
 0x14b   :  { %v667_v27 = vmul.f32 1.442695, %v664_v61  ;;  %v1651_v61 = vld [vmem:[#allocation12_spill] sm:$0xff] }
 0x14d   :  { %1081 = vpow2.f32 %v667_v27  ;;  %v1652_v27 = vld [vmem:[#allocation13_spill] sm:$0xff] }
 0x15a   :  { %v1082_v62 = vpop.eup %1081 }
 0x15b   :  { %676 = vperm.xlu1 %1070, %v1082_v62   ;;  %v1653_v62 = vld [vmem:[#allocation14_spill] sm:$0xff] }
 0x1ab   :  { %v672_v17 = vpop.permute.xlu0 %671 }
 0x1ac   :  { %v679_v42 = vmul.f32 %v672_v17, %v1372_v18  ;;  %v680_v41 = vmul.f32 %v672_v17, %v1374_v20  ;;  %v681_v63 = vmul.f32 %v672_v17, %v1376_v25  ;;  %v682_v47 = vmul.f32 %v672_v17, %v1380_v28 }
 0x1ad   :  { %v683_v8 = vmul.f32 %v672_v17, %v1389_v34  ;;  %v684_v36 = vmul.f32 %v672_v17, %v1397_v43  ;;  %v685_v51 = vmul.f32 %v672_v17, %v1401_v45  ;;  %v686_v29 = vmul.f32 %v672_v17, %v1410_v49 }
 0x1ae   :  { %v687_v35 = vmul.f32 %v672_v17, %v1418_v12  ;;  %v688_v32 = vmul.f32 %v672_v17, %v1425_v30  ;;  %v689_v18 = vmul.f32 %v672_v17, %v1428_v31  ;;  %v690_v20 = vmul.f32 %v672_v17, %v1435_v46 }
 0x1af   :  { %v691_v25 = vmul.f32 %v672_v17, %v1444_v9  ;;  %v692_v28 = vmul.f32 %v672_v17, %v1452_v37  ;;  %v693_v34 = vmul.f32 %v672_v17, %v1454_v40  ;;  %v694_v43 = vmul.f32 %v672_v17, %v1463_v59  ;;  %v1655_v17 = vld [vmem:[#allocation16_spill] sm:$0xff] }
 0x1b0   :  { %v711_v45 = vadd.f32 %v679_v42, %v1190_v0  ;;  %v712_v49 = vadd.f32 %v680_v41, %v1192_v1  ;;  %v713_v12 = vadd.f32 %v681_v63, %v1194_v2  ;;  %v714_v30 = vadd.f32 %v682_v47, %v1196_v3  ;;  %v1656_v42 = vld [vmem:[#allocation17_spill] sm:$0xff]  ;;  %v1657_v41 = vld [vmem:[#allocation18_spill] sm:$0xff]  ;;  %v1658_v47 = vld [vmem:[#allocation19_spill] sm:$0xff] }
 0x1b1   :  { %v715_v31 = vadd.f32 %v683_v8, %v1204_v7  ;;  %v716_v46 = vadd.f32 %v684_v36, %v1211_v10  ;;  %v717_v9 = vadd.f32 %v685_v51, %v1214_v11  ;;  %v718_v37 = vadd.f32 %v686_v29, %v1222_v16  ;;  %v1659_v8 = vld [vmem:[#allocation20_spill] sm:$0xff]  ;;  %v1660_v51 = vld [vmem:[#allocation21_spill] sm:$0xff] }
 0x1b2   :  { %v719_v40 = vadd.f32 %v687_v35, %v1231_v33  ;;  %v720_v59 = vadd.f32 %v688_v32, %v1240_v38  ;;  %v721_v0 = vadd.f32 %v689_v18, %v1253_v44  ;;  %v722_v1 = vadd.f32 %v690_v20, %v1268_v5  ;;  %743 = vst [vmem:[#allocation8] sm:$0xff] %v711_v45  ;;  %v1661_v35 = vld [vmem:[#allocation22_spill] sm:$0xff]  ;;  %v1662_v18 = vld [vmem:[#allocation23_spill] sm:$0xff] }
 0x1b3   :  { %744 = vst [vmem:[#allocation8 + $0x8] sm:$0xff] %v712_v49  ;;  %745 = vst [vmem:[#allocation8 + $0x10] sm:$0xff] %v713_v12  ;;  %v723_v2 = vadd.f32 %v691_v25, %v1279_v15  ;;  %v724_v3 = vadd.f32 %v692_v28, %v1284_v19  ;;  %v725_v7 = vadd.f32 %v693_v34, %v1295_v24  ;;  %v1663_v25 = vld [vmem:[#allocation24_spill] sm:$0xff]  ;;  %v1664_v34 = vld [vmem:[#allocation25_spill] sm:$0xff] }
 0x1b4   :  { %746 = vst [vmem:[#allocation8 + $0x18] sm:$0xff] %v714_v30  ;;  %v726_v10 = vadd.f32 %v694_v43, %v1310_v53  ;;  %747 = vst [vmem:[#allocation8 + $0x20] sm:$0xff] %v715_v31  ;;  %v1665_v45 = vld [vmem:[#allocation26_spill] sm:$0xff] }
 0x1b5   :  { %748 = vst [vmem:[#allocation8 + $0x28] sm:$0xff] %v716_v46  ;;  %749 = vst [vmem:[#allocation8 + $0x30] sm:$0xff] %v717_v9 }
 0x1b6   :  { %750 = vst [vmem:[#allocation8 + $0x38] sm:$0xff] %v718_v37  ;;  %751 = vst [vmem:[#allocation8 + $0x40] sm:$0xff] %v719_v40 }
 0x1b7   :  { %752 = vst [vmem:[#allocation8 + $0x48] sm:$0xff] %v720_v59  ;;  %753 = vst [vmem:[#allocation8 + $0x50] sm:$0xff] %v721_v0 }
 0x1b8   :  { %754 = vst [vmem:[#allocation8 + $0x58] sm:$0xff] %v722_v1  ;;  %755 = vst [vmem:[#allocation8 + $0x60] sm:$0xff] %v723_v2 }
 0x1b9   :  { %756 = vst [vmem:[#allocation8 + $0x68] sm:$0xff] %v724_v3  ;;  %757 = vst [vmem:[#allocation8 + $0x70] sm:$0xff] %v725_v7 }
 0x1ba   :  { %758 = vst [vmem:[#allocation8 + $0x78] sm:$0xff] %v726_v10 }
 0x1d6   :  { %v677_v11 = vpop.permute.xlu1 %676 }
 0x1d7   :  { %v695_v16 = vmul.f32 %v677_v11, %v1474_v56  ;;  %v696_v33 = vmul.f32 %v677_v11, %v1476_v52  ;;  %v697_v38 = vmul.f32 %v677_v11, %v1478_v57  ;;  %v698_v44 = vmul.f32 %v677_v11, %v1480_v58 }
 0x1d8   :  { %v699_v5 = vmul.f32 %v677_v11, %v1488_v4  ;;  %v700_v15 = vmul.f32 %v677_v11, %v1492_v26  ;;  %v701_v19 = vmul.f32 %v677_v11, %v1496_v48  ;;  %v702_v24 = vmul.f32 %v677_v11, %v1500_v55 }
 0x1d9   :  { %v703_v53 = vmul.f32 %v677_v11, %v1504_v13  ;;  %v704_v50 = vmul.f32 %v677_v11, %v1508_v6  ;;  %v705_v56 = vmul.f32 %v677_v11, %v1512_v60  ;;  %v706_v52 = vmul.f32 %v677_v11, %v1516_v39  ;;  %v1654_v60 = vld [vmem:[#allocation15_spill] sm:$0xff] }
 0x1da   :  { %v707_v57 = vmul.f32 %v677_v11, %v1520_v23  ;;  %v708_v58 = vmul.f32 %v677_v11, %v1524_v22  ;;  %v709_v4 = vmul.f32 %v677_v11, %v1650_v14  ;;  %v710_v26 = vmul.f32 %v677_v11, %v1532_v54 }
 0x1db   :  { %v727_v48 = vadd.f32 %v1083_v21, %v695_v16  ;;  %v728_v55 = vadd.f32 %v696_v33, %v1651_v61  ;;  %v729_v13 = vadd.f32 %v697_v38, %v1652_v27  ;;  %v730_v6 = vadd.f32 %v698_v44, %v1653_v62 }
 0x1dc   :  { %v731_v39 = vadd.f32 %v699_v5, %v1654_v60  ;;  %v732_v23 = vadd.f32 %v700_v15, %v1655_v17  ;;  %v733_v22 = vadd.f32 %v701_v19, %v1656_v42  ;;  %v734_v63 = vadd.f32 %v702_v24, %v1657_v41 }
 0x1dd   :  { %v735_v54 = vadd.f32 %v703_v53, %v1658_v47  ;;  %v736_v36 = vadd.f32 %v704_v50, %v1659_v8  ;;  %v737_v29 = vadd.f32 %v705_v56, %v1660_v51  ;;  %v738_v32 = vadd.f32 %v706_v52, %v1661_v35  ;;  %759 = vst [vmem:[#allocation8 + $0x80] sm:$0xff] %v727_v48 }
 0x1de   :  { %760 = vst [vmem:[#allocation8 + $0x88] sm:$0xff] %v728_v55  ;;  %761 = vst [vmem:[#allocation8 + $0x90] sm:$0xff] %v729_v13  ;;  %v739_v20 = vadd.f32 %v707_v57, %v1662_v18  ;;  %v740_v28 = vadd.f32 %v708_v58, %v1663_v25  ;;  %v741_v43 = vadd.f32 %v709_v4, %v1664_v34 }
 0x1df   :  { %762 = vst [vmem:[#allocation8 + $0x98] sm:$0xff] %v730_v6  ;;  %v742_v49 = vadd.f32 %v710_v26, %v1665_v45  ;;  %763 = vst [vmem:[#allocation8 + $0xa0] sm:$0xff] %v731_v39 }
 0x1e0   :  { %764 = vst [vmem:[#allocation8 + $0xa8] sm:$0xff] %v732_v23  ;;  %765 = vst [vmem:[#allocation8 + $0xb0] sm:$0xff] %v733_v22 }
 0x1e1   :  { %766 = vst [vmem:[#allocation8 + $0xb8] sm:$0xff] %v734_v63  ;;  %767 = vst [vmem:[#allocation8 + $0xc0] sm:$0xff] %v735_v54 }
 0x1e2   :  { %768 = vst [vmem:[#allocation8 + $0xc8] sm:$0xff] %v736_v36  ;;  %769 = vst [vmem:[#allocation8 + $0xd0] sm:$0xff] %v737_v29 }
 0x1e3   :  { %770 = vst [vmem:[#allocation8 + $0xd8] sm:$0xff] %v738_v32  ;;  %771 = vst [vmem:[#allocation8 + $0xe0] sm:$0xff] %v739_v20 }
 0x1e4   :  { %772 = vst [vmem:[#allocation8 + $0xe8] sm:$0xff] %v740_v28  ;;  %773 = vst [vmem:[#allocation8 + $0xf0] sm:$0xff] %v741_v43 }
 0x1e5   :  { %774 = vst [vmem:[#allocation8 + $0xf8] sm:$0xff] %v742_v49 }
 0x1e6   :  { %1127 = shalt.err (!%p1124_p0)
}
 0x1e7   :  { %786 = dma.vmem_to_hbm [thread:$0]  %s781_s24, 4096, %s1617_s4, [#allocation7], %s1144_s0, %s1144_s0, %s1145_s23  }
 0x1e8   :  { %1140 = dma.done.wait [#allocation7], 4096  }
 0x1e9   :  { %1141 = vsyncadd [#allocation7], 4294963200 }
 0x1ea   :  { %790 = vsyncpa [#allocation6], 1 }
 0x1eb   :  { %791 = vsyncpa [#allocation7], 1 }

</bundles_post_ra>
